<compile_context>
chip_gen: v7x
topology: tpu7x:2x2x1
jax: 0.10.0
libtpu: 0.0.40
codegen_flags: <defaults>
</compile_context>

<pallas_src>
from math import sqrt

import jax
import jax.numpy as jnp
from jax.experimental import pallas as pl
from jax.experimental.pallas import tpu as pltpu


def cem_mlp_kernel(inp_ref, act_ref, w1i_ref, w1a_ref, b1_ref,
                   w2_ref, b2_ref, w3t_ref, b3_ref, q_ref, h_ref):
    cdt = w1i_ref.dtype  # compute dtype of the matmul operands (f32 or bf16)

    # fc1 on the split input (avoids materializing concat([inputs, actions])).
    # In-kernel casts ride free VPU slack (no wrapper-side cast pass).
    h1 = (jnp.dot(inp_ref[...].astype(cdt), w1i_ref[...],
                  preferred_element_type=jnp.float32)
          + jnp.dot(act_ref[...].astype(cdt), w1a_ref[...],
                    preferred_element_type=jnp.float32)
          + b1_ref[...])
    h1 = jnp.maximum(h1, 0.0)

    # fc2
    h2 = jnp.dot(h1.astype(cdt), w2_ref[...],
                 preferred_element_type=jnp.float32) + b2_ref[...]
    h2 = jnp.maximum(h2, 0.0)

    # fc3: output width is 1, so use elementwise multiply + lane reduction
    # instead of a padded MXU matmul -> Q writeback is only 4 B/row.
    q = jnp.sum(h2 * w3t_ref[...], axis=-1, keepdims=True) + b3_ref[...]

    q_ref[...] = q.astype(q_ref.dtype)
    h_ref[...] = h2.astype(h_ref.dtype)


def _round_up(x, m):
    return ((x + m - 1) // m) * m


def _num_tensorcores():
    """2 TensorCores per chip on v7x; 1 on v5e / v6e (conservative default)."""
    try:
        kind = jax.devices()[0].device_kind.lower()
    except Exception:
        return 1
    return 2 if ("7x" in kind or "v7" in kind) else 1


def cem_agent_forward(inputs, actions, params, *, block_b=4096, use_bf16=False,
                      num_tensorcores=None):
    """inputs: [B, input_shape]; actions: [..., n_actions] (flattened to [B, n_actions]).

    NOTE: `actions` is required here (the CEM critic always receives actions);
    the PyTorch `actions is None` branch is not exposed.
    For best throughput fold any CEM sample dimension into B and make a single
    call rather than looping per sample batch.
    """
    w1, b1, w2, b2, w3, b3 = params
    n_actions = actions.shape[-1]
    actions_flat = actions.reshape(-1, n_actions)   # actions.view(-1, n_actions)
    B, d_in = inputs.shape
    H = w1.shape[1]

    # Split W1 so the wrapper never materializes concat([inputs, actions]).
    w1_inp = w1[:d_in]
    w1_act = w1[d_in:]
    w3t = w3.T                      # (1, H): row vector for the lane reduction
    # b3 stays (1, 1)

    if num_tensorcores is None:
        num_tensorcores = _num_tensorcores()

    # ---- batch tiling -------------------------------------------------------
    # One big tile per call when the batch fits (no per-step overhead on 1-TC
    # chips); on v7x split the batch so the grid is a multiple of the core
    # count and shard it with CORE_PARALLEL.
    b8 = _round_up(B, 8)
    bb = min(_round_up(block_b, 8), b8)
    if num_tensorcores > 1 and b8 >= 8 * num_tensorcores:
        steps = _round_up(pl.cdiv(b8, bb), num_tensorcores)
        bb = _round_up(pl.cdiv(b8, steps), 8)
    grid = (pl.cdiv(B, bb),)        # ragged final block: OOB writes dropped
    use_core_parallel = (num_tensorcores > 1
                         and grid[0] >= num_tensorcores
                         and grid[0] % num_tensorcores == 0)
    dim_sem = (pltpu.CORE_PARALLEL,) if use_core_parallel else ("parallel",)

    if use_bf16:
        # bf16 matmul operands, f32 accumulation (v6e/v7x). Weights only; the
        # activations are cast inside the kernel. fc3/biases stay f32.
        w1_inp, w1_act, w2 = (t.astype(jnp.bfloat16) for t in (w1_inp, w1_act, w2))

    full = lambda i: (0, 0)
    row = lambda i: (i, 0)

    q, h = pl.pallas_call(
        cem_mlp_kernel,
        out_shape=(
            jax.ShapeDtypeStruct((B, 1), jnp.float32),
            jax.ShapeDtypeStruct((B, H), jnp.float32),
        ),
        grid_spec=pltpu.PrefetchScalarGridSpec(
            num_scalar_prefetch=0,
            grid=grid,
            in_specs=[
                pl.BlockSpec((bb, d_in), row),        # inputs tile
                pl.BlockSpec((bb, n_actions), row),   # actions tile
                pl.BlockSpec((d_in, H), full),        # W1[:d_in, :]
                pl.BlockSpec((n_actions, H), full),   # W1[d_in:, :]
                pl.BlockSpec((1, H), full),           # b1
                pl.BlockSpec((H, H), full),           # W2
                pl.BlockSpec((1, H), full),           # b2
                pl.BlockSpec((1, H), full),           # W3^T (row vector)
                pl.BlockSpec((1, 1), full),           # b3
            ],
            out_specs=[
                pl.BlockSpec((bb, 1), row),           # Q
                pl.BlockSpec((bb, H), row),           # hidden_state
            ],
        ),
        compiler_params=pltpu.CompilerParams(dimension_semantics=dim_sem),
    )(inputs, actions_flat, w1_inp, w1_act, b1, w2, b2, w3t, b3)

    return {"Q": q, "hidden_state": h}


def init_params(key, num_inputs, hidden_size):
    """Deterministic PyTorch-Linear-style init; weights stored [in, out]."""
    ks = jax.random.split(key, 6)

    def linear(kw, kb, fan_in, fan_out):
        bound = 1.0 / sqrt(fan_in)
        w = jax.random.uniform(kw, (fan_in, fan_out), jnp.float32, -bound, bound)
        b = jax.random.uniform(kb, (1, fan_out), jnp.float32, -bound, bound)
        return w, b

    w1, b1 = linear(ks[0], ks[1], num_inputs, hidden_size)
    w2, b2 = linear(ks[2], ks[3], hidden_size, hidden_size)
    w3, b3 = linear(ks[4], ks[5], hidden_size, 1)
    return (w1, b1, w2, b2, w3, b3)


def reference_forward(inputs, actions, params):
    w1, b1, w2, b2, w3, b3 = params
    x = jnp.concatenate([inputs, actions.reshape(-1, actions.shape[-1])], axis=-1)
    h1 = jnp.maximum(x @ w1 + b1, 0.0)
    h2 = jnp.maximum(h1 @ w2 + b2, 0.0)
    q = h2 @ w3 + b3
    return {"Q": q, "hidden_state": h2}


if __name__ == "__main__":
    # Small shapes consistent with the module:
    #   input_shape=16, n_actions=4, rnn_hidden_dim=32, batch=2, n_agents=4 -> B=8
    input_shape, n_actions, hidden = 16, 4, 32
    bs, n_agents = 2, 4
    B = bs * n_agents

    key = jax.random.PRNGKey(0)
    k_in, k_act, k_par, k_in2, k_act2 = jax.random.split(key, 5)
    inputs = jax.random.normal(k_in, (B, input_shape), jnp.float32)
    actions = jax.random.normal(k_act, (bs, n_agents, n_actions), jnp.float32)
    params = init_params(k_par, input_shape + n_actions, hidden)

    out = cem_agent_forward(inputs, actions, params)
    jax.block_until_ready(out)
    ref = reference_forward(inputs, actions, params)
    assert out["Q"].shape == (B, 1)
    assert out["hidden_state"].shape == (B, hidden)
    assert jnp.allclose(out["Q"], ref["Q"], atol=1e-4, rtol=1e-4)
    assert jnp.allclose(out["hidden_state"], ref["hidden_state"], atol=1e-4, rtol=1e-4)

    # Second shape: batch that is not a multiple of 8 exercises the ragged
    # final-block path (no wrapper padding / slicing anymore).
    B2 = 100
    inputs2 = jax.random.normal(k_in2, (B2, input_shape), jnp.float32)
    actions2 = jax.random.normal(k_act2, (B2, n_actions), jnp.float32)
    out2 = cem_agent_forward(inputs2, actions2, params)
    jax.block_until_ready(out2)
    ref2 = reference_forward(inputs2, actions2, params)
    assert out2["Q"].shape == (B2, 1)
    assert out2["hidden_state"].shape == (B2, hidden)
    assert jnp.allclose(out2["Q"], ref2["Q"], atol=1e-4, rtol=1e-4)
    assert jnp.allclose(out2["hidden_state"], ref2["hidden_state"], atol=1e-4, rtol=1e-4)

    print("KERNEL_OK")
</pallas_src>

<mosaic_0001>
module attributes {stable_mosaic.version = 11 : i64} {
  func.func @cem_mlp_kernel(%arg0: i32, %arg1: memref<8x16xf32, #tpu.memory_space<vmem>>, %arg2: memref<8x4xf32, #tpu.memory_space<vmem>>, %arg3: memref<16x32xf32, #tpu.memory_space<vmem>>, %arg4: memref<4x32xf32, #tpu.memory_space<vmem>>, %arg5: memref<1x32xf32, #tpu.memory_space<vmem>>, %arg6: memref<32x32xf32, #tpu.memory_space<vmem>>, %arg7: memref<1x32xf32, #tpu.memory_space<vmem>>, %arg8: memref<1x32xf32, #tpu.memory_space<vmem>>, %arg9: memref<1x1xf32, #tpu.memory_space<vmem>>, %arg10: memref<8x1xf32, #tpu.memory_space<vmem>>, %arg11: memref<8x32xf32, #tpu.memory_space<vmem>>) attributes {dimension_semantics = [#tpu.dimension_semantics<parallel>], iteration_bounds = array<i64: 1>, scalar_prefetch = 0 : i64, scratch_operands = 0 : i64, tpu.core_type = #tpu.core_type<tc>, window_params = [{transform_indices = @transform_0, window_bounds = array<i64: 8, 16>}, {transform_indices = @transform_1, window_bounds = array<i64: 8, 4>}, {pipeline_mode = #tpu.pipeline_mode<synchronous>, transform_indices = @transform_2, window_bounds = array<i64: 16, 32>}, {pipeline_mode = #tpu.pipeline_mode<synchronous>, transform_indices = @transform_3, window_bounds = array<i64: 4, 32>}, {pipeline_mode = #tpu.pipeline_mode<synchronous>, transform_indices = @transform_4, window_bounds = array<i64: 1, 32>}, {pipeline_mode = #tpu.pipeline_mode<synchronous>, transform_indices = @transform_5, window_bounds = array<i64: 32, 32>}, {pipeline_mode = #tpu.pipeline_mode<synchronous>, transform_indices = @transform_6, window_bounds = array<i64: 1, 32>}, {pipeline_mode = #tpu.pipeline_mode<synchronous>, transform_indices = @transform_7, window_bounds = array<i64: 1, 32>}, {pipeline_mode = #tpu.pipeline_mode<synchronous>, transform_indices = @transform_8, window_bounds = array<i64: 1, 1>}, {transform_indices = @transform_9, window_bounds = array<i64: 8, 1>}, {transform_indices = @transform_10, window_bounds = array<i64: 8, 32>}]} {
    %c0 = arith.constant 0 : index
    %c0_0 = arith.constant 0 : index
    %0 = vector.load %arg1[%c0, %c0_0] : memref<8x16xf32, #tpu.memory_space<vmem>>, vector<8x16xf32>
    %c0_1 = arith.constant 0 : index
    %c0_2 = arith.constant 0 : index
    %1 = vector.load %arg3[%c0_1, %c0_2] : memref<16x32xf32, #tpu.memory_space<vmem>>, vector<16x32xf32>
    %cst = arith.constant dense<0.000000e+00> : vector<8x32xf32>
    %2 = tpu.matmul %0, %1, %cst {dimension_numbers = #tpu.dot_dimension_numbers<[1], [0], [0], [1], [0, 0, 1, 1], [], []>} : vector<8x16xf32>, vector<16x32xf32>, vector<8x32xf32> -> vector<8x32xf32>
    %c0_3 = arith.constant 0 : index
    %c0_4 = arith.constant 0 : index
    %3 = vector.load %arg2[%c0_3, %c0_4] : memref<8x4xf32, #tpu.memory_space<vmem>>, vector<8x4xf32>
    %c0_5 = arith.constant 0 : index
    %c0_6 = arith.constant 0 : index
    %4 = vector.load %arg4[%c0_5, %c0_6] : memref<4x32xf32, #tpu.memory_space<vmem>>, vector<4x32xf32>
    %cst_7 = arith.constant dense<0.000000e+00> : vector<8x32xf32>
    %5 = tpu.matmul %3, %4, %cst_7 {dimension_numbers = #tpu.dot_dimension_numbers<[1], [0], [0], [1], [0, 0, 1, 1], [], []>} : vector<8x4xf32>, vector<4x32xf32>, vector<8x32xf32> -> vector<8x32xf32>
    %6 = arith.addf %2, %5 : vector<8x32xf32>
    %c0_8 = arith.constant 0 : index
    %c0_9 = arith.constant 0 : index
    %7 = vector.load %arg5[%c0_8, %c0_9] : memref<1x32xf32, #tpu.memory_space<vmem>>, vector<1x32xf32>
    %8 = vector.broadcast %7 : vector<1x32xf32> to vector<8x32xf32>
    %9 = arith.addf %6, %8 : vector<8x32xf32>
    %cst_10 = arith.constant 0.000000e+00 : f32
    %10 = vector.broadcast %cst_10 : f32 to vector<8x32xf32>
    %11 = arith.maximumf %9, %10 : vector<8x32xf32>
    %c0_11 = arith.constant 0 : index
    %c0_12 = arith.constant 0 : index
    %12 = vector.load %arg6[%c0_11, %c0_12] : memref<32x32xf32, #tpu.memory_space<vmem>>, vector<32x32xf32>
    %cst_13 = arith.constant dense<0.000000e+00> : vector<8x32xf32>
    %13 = tpu.matmul %11, %12, %cst_13 {dimension_numbers = #tpu.dot_dimension_numbers<[1], [0], [0], [1], [0, 0, 1, 1], [], []>} : vector<8x32xf32>, vector<32x32xf32>, vector<8x32xf32> -> vector<8x32xf32>
    %c0_14 = arith.constant 0 : index
    %c0_15 = arith.constant 0 : index
    %14 = vector.load %arg7[%c0_14, %c0_15] : memref<1x32xf32, #tpu.memory_space<vmem>>, vector<1x32xf32>
    %15 = vector.broadcast %14 : vector<1x32xf32> to vector<8x32xf32>
    %16 = arith.addf %13, %15 : vector<8x32xf32>
    %cst_16 = arith.constant 0.000000e+00 : f32
    %17 = vector.broadcast %cst_16 : f32 to vector<8x32xf32>
    %18 = arith.maximumf %16, %17 : vector<8x32xf32>
    %c0_17 = arith.constant 0 : index
    %c0_18 = arith.constant 0 : index
    %19 = vector.load %arg8[%c0_17, %c0_18] : memref<1x32xf32, #tpu.memory_space<vmem>>, vector<1x32xf32>
    %20 = vector.broadcast %19 : vector<1x32xf32> to vector<8x32xf32>
    %21 = arith.mulf %18, %20 : vector<8x32xf32>
    %cst_19 = arith.constant dense<0.000000e+00> : vector<8xf32>
    %22 = vector.multi_reduction <add>, %21, %cst_19 [1] : vector<8x32xf32> to vector<8xf32>
    %23 = vector.shape_cast %22 : vector<8xf32> to vector<8x1xf32>
    %c0_20 = arith.constant 0 : index
    %c0_21 = arith.constant 0 : index
    %24 = vector.load %arg9[%c0_20, %c0_21] : memref<1x1xf32, #tpu.memory_space<vmem>>, vector<1x1xf32>
    %25 = vector.broadcast %24 : vector<1x1xf32> to vector<8x1xf32>
    %26 = arith.addf %23, %25 : vector<8x1xf32>
    %c0_22 = arith.constant 0 : index
    %c0_23 = arith.constant 0 : index
    %27 = vector.load %arg10[%c0_22, %c0_23] : memref<8x1xf32, #tpu.memory_space<vmem>>, vector<8x1xf32>
    tpu.vector_store %arg10[%c0_22, %c0_23], %26 {strides = array<i32>} : memref<8x1xf32, #tpu.memory_space<vmem>>, vector<8x1xf32>,
    %c0_24 = arith.constant 0 : index
    %c0_25 = arith.constant 0 : index
    %28 = vector.load %arg11[%c0_24, %c0_25] : memref<8x32xf32, #tpu.memory_space<vmem>>, vector<8x32xf32>
    tpu.vector_store %arg11[%c0_24, %c0_25], %18 {strides = array<i32>} : memref<8x32xf32, #tpu.memory_space<vmem>>, vector<8x32xf32>,
    return
  }
  func.func @transform_0(%arg0: i32) -> (i32, i32) {
    %c0_i32 = arith.constant 0 : i32
    %c0_i32_0 = arith.constant 0 : i32
    return %arg0, %c0_i32 : i32, i32
  }
  func.func @transform_1(%arg0: i32) -> (i32, i32) {
    %c0_i32 = arith.constant 0 : i32
    %c0_i32_0 = arith.constant 0 : i32
    return %arg0, %c0_i32 : i32, i32
  }
  func.func @transform_2(%arg0: i32) -> (i32, i32) {
    %c0_i32 = arith.constant 0 : i32
    %c0_i32_0 = arith.constant 0 : i32
    %c0_i32_1 = arith.constant 0 : i32
    return %c0_i32, %c0_i32_0 : i32, i32
  }
  func.func @transform_3(%arg0: i32) -> (i32, i32) {
    %c0_i32 = arith.constant 0 : i32
    %c0_i32_0 = arith.constant 0 : i32
    %c0_i32_1 = arith.constant 0 : i32
    return %c0_i32, %c0_i32_0 : i32, i32
  }
  func.func @transform_4(%arg0: i32) -> (i32, i32) {
    %c0_i32 = arith.constant 0 : i32
    %c0_i32_0 = arith.constant 0 : i32
    %c0_i32_1 = arith.constant 0 : i32
    return %c0_i32, %c0_i32_0 : i32, i32
  }
  func.func @transform_5(%arg0: i32) -> (i32, i32) {
    %c0_i32 = arith.constant 0 : i32
    %c0_i32_0 = arith.constant 0 : i32
    %c0_i32_1 = arith.constant 0 : i32
    return %c0_i32, %c0_i32_0 : i32, i32
  }
  func.func @transform_6(%arg0: i32) -> (i32, i32) {
    %c0_i32 = arith.constant 0 : i32
    %c0_i32_0 = arith.constant 0 : i32
    %c0_i32_1 = arith.constant 0 : i32
    return %c0_i32, %c0_i32_0 : i32, i32
  }
  func.func @transform_7(%arg0: i32) -> (i32, i32) {
    %c0_i32 = arith.constant 0 : i32
    %c0_i32_0 = arith.constant 0 : i32
    %c0_i32_1 = arith.constant 0 : i32
    return %c0_i32, %c0_i32_0 : i32, i32
  }
  func.func @transform_8(%arg0: i32) -> (i32, i32) {
    %c0_i32 = arith.constant 0 : i32
    %c0_i32_0 = arith.constant 0 : i32
    %c0_i32_1 = arith.constant 0 : i32
    return %c0_i32, %c0_i32_0 : i32, i32
  }
  func.func @transform_9(%arg0: i32) -> (i32, i32) {
    %c0_i32 = arith.constant 0 : i32
    %c0_i32_0 = arith.constant 0 : i32
    return %arg0, %c0_i32 : i32, i32
  }
  func.func @transform_10(%arg0: i32) -> (i32, i32) {
    %c0_i32 = arith.constant 0 : i32
    %c0_i32_0 = arith.constant 0 : i32
    return %arg0, %c0_i32 : i32, i32
  }
}

</mosaic_0001>

<bundles_post_ra>
// kernel: tpu_custom_call.1
= control target key start
LH: loop header
LB: loop body
LE: loop exit
PB: predicated region body
PF: predicated region fallthrough
CT: control target
= control target key end

     0   :  { %s663_s0 = inlined_call_operand.hbm [shape: f32[8,16], index: 0, kind: input, shape index: {}]   ;;  %s664_s1 = inlined_call_operand.vmem [shape: f32[8,4], index: 1, kind: input, shape index: {}]   ;;  %s665_s2 = inlined_call_operand.hbm [shape: f32[16,32], index: 2, kind: input, shape index: {}]   ;;  %s666_s3 = inlined_call_operand.hbm [shape: f32[4,32], index: 3, kind: input, shape index: {}]   ;;  %s667_s4 = inlined_call_operand.vmem [shape: f32[1,32], index: 4, kind: input, shape index: {}]   ;;  %s668_s5 = inlined_call_operand.vmem [shape: f32[32,32], index: 5, kind: input, shape index: {}]   ;;  %s669_s6 = inlined_call_operand.vmem [shape: f32[1,32], index: 6, kind: input, shape index: {}]   ;;  %s670_s7 = inlined_call_operand.vmem [shape: f32[1,32], index: 7, kind: input, shape index: {}]   ;;  %s671_s8 = inlined_call_operand.<no memory space> [shape: f32[1,1], index: 8, kind: input, shape index: {}]   ;;  %s672_s9 = inlined_call_operand.vmem [shape: f32[8,1], index: 9, kind: output, shape index: {0}]   ;;  %s673_s10 = inlined_call_operand.hbm [shape: f32[8,32], index: 10, kind: output, shape index: {1}]  }
   0x1   :  { %v16_v0 = vstv %s671_s8 }
   0x2   :  { %17 = vst [vmem:[#allocation2] sm:$0x1] %v16_v0 }
   0x3   :  { %18 = vsyncpa [#allocation4], 0 }
   0x4   :  { %19 = vsyncpa [#allocation7], 0 }
   0x5   :  { %20 = vsyncpa [#allocation5], 0  ;;  %s521_s15 = smov [#allocation6]   ;;  %s427_s19 = scalar_lea.hbm %s665_s2, 256 }
   0x6   :  { %s38_s16 = sshll.u32 %s521_s15, 4  ;;  %p428_p0 = scmp.ne.s32.totalorder %s665_s2, %s427_s19  ;;  %s39_s16 = int_to_ptr.vmem [resolvable:$true] %s38_s16 }
   0x7   :  { %p431_p1 = scmp.lt.u32.totalorder %s427_s19, %s665_s2 }
   0x9   :  { %p433_p2 = pnand %p431_p1, %p428_p0 }
   0xb   :  { %436 = shalt.err (!%p433_p2)
}
   0xc   :  { %s437_s8 = scalar_lea.vmem %s39_s16, 256  ;;  %p442_p4 = scmp.lt.s32.totalorder %s39_s16, %s39_s16 }
   0xd   :  { %p438_p3 = scmp.ne.s32.totalorder %s39_s16, %s437_s8  ;;  %p443_p5 = scmp.lt.s32.totalorder %s437_s8, %s437_s8 }
   0xf   :  { %p444_p6 = por %p443_p5, %p442_p4 }
  0x11   :  { %p445_p7 = pnand %p444_p6, %p438_p3 }
  0x13   :  { %448 = shalt.err (!%p445_p7)
}
  0x14   :  { %s522_s24 = smov 128   ;;  %s523_s25 = smov 8  }
  0x15   :  { %44 = dma.hbm_to_vmem [thread:$0]  %s665_s2, 256, %s39_s16, [#allocation7], %s522_s24, %s522_s24, %s523_s25  }
  0x16   :  { %s524_s28 = smov [#allocation3]   ;;  %s525_s30 = smov [#allocation8]  }
  0x17   :  { %s27_s29 = sshll.u32 %s524_s28, 4  ;;  %s51_s11 = sshll.u32 %s525_s30, 4  ;;  %s28_s29 = int_to_ptr.vmem [resolvable:$true] %s27_s29  ;;  %s52_s11 = int_to_ptr.vmem [resolvable:$true] %s51_s11 }
  0x18   :  { %s449_s14 = scalar_lea.hbm %s663_s0, 128 }
  0x19   :  { %p450_p8 = scmp.ne.s32.totalorder %s663_s0, %s449_s14  ;;  %p453_p9 = scmp.lt.u32.totalorder %s449_s14, %s663_s0 }
  0x1b   :  { %p455_p10 = pnand %p453_p9, %p450_p8 }
  0x1d   :  { %458 = shalt.err (!%p455_p10)
}
  0x1e   :  { %s459_s2 = scalar_lea.vmem %s28_s29, 128  ;;  %p464_p12 = scmp.lt.s32.totalorder %s28_s29, %s28_s29 }
  0x1f   :  { %p460_p11 = scmp.ne.s32.totalorder %s28_s29, %s459_s2  ;;  %p465_p13 = scmp.lt.s32.totalorder %s459_s2, %s459_s2 }
  0x21   :  { %p466_p0 = por %p465_p13, %p464_p12 }
  0x23   :  { %p467_p1 = pnand %p466_p0, %p460_p11 }
  0x25   :  { %470 = shalt.err (!%p467_p1)
}
  0x26   :  { %30 = dma.hbm_to_vmem [thread:$0]  %s663_s0, 128, %s28_s29, [#allocation4]  }
  0x27   :  { %s471_s23 = scalar_lea.hbm %s666_s3, 64 }
  0x28   :  { %p472_p2 = scmp.ne.s32.totalorder %s666_s3, %s471_s23  ;;  %p475_p3 = scmp.lt.u32.totalorder %s471_s23, %s666_s3 }
  0x2a   :  { %p477_p4 = pnand %p475_p3, %p472_p2 }
  0x2c   :  { %480 = shalt.err (!%p477_p4)
}
  0x2d   :  { %s481_s27 = scalar_lea.vmem %s52_s11, 64  ;;  %p486_p6 = scmp.lt.s32.totalorder %s52_s11, %s52_s11 }
  0x2e   :  { %p482_p5 = scmp.ne.s32.totalorder %s52_s11, %s481_s27  ;;  %p487_p7 = scmp.lt.s32.totalorder %s481_s27, %s481_s27 }
  0x30   :  { %p488_p8 = por %p487_p7, %p486_p6 }
  0x32   :  { %p489_p9 = pnand %p488_p8, %p482_p5 }
  0x34   :  { %492 = shalt.err (!%p489_p9)
}
  0x35   :  { %54 = dma.hbm_to_vmem [thread:$0]  %s666_s3, 64, %s52_s11, [#allocation7]  }
  0x36   :  { %515 = dma.done.wait [#allocation4], 128  }
  0x37   :  { %516 = vsyncadd [#allocation4], 4294967168 }
  0x38   :  { %517 = dma.done.wait [#allocation7], 320  }
  0x39   :  { %518 = vsyncadd [#allocation7], 4294966976  ;;  %v526_v1 = vmov 0.0   ;;  %vm527_vm0 = vmmov 0   ;;  %v528_v2 = vmov 0.0|0.0   ;;  %vm83_vm1 = vcmask 1043456  }
  0x3a   :  { %386 = vmatprep.subr.mxu1 %v526_v1  ;;  %388 = vmatprep.mubr.msk.f32.mxu1 %vm527_vm0, %v526_v1  ;;  %vm79_vm2 = vcmask 31744   ;;  %v78_v3 = vld [vmem:[#allocation8] sm:$0xf]  ;;  %v77_v4 = vld [vmem:[%s664_s1] sm:$0xff]  ;;  %v75_v5 = vld [vmem:[#allocation6] sm:$0xff]  ;;  %vm157_vm3 = vcmask 130048  }
  0x3b   :  { %412 = vmatprep.subr.bf16.mxu0 %v528_v2  ;;  %406 = vmatprep.mubr.msk.f32.mxu0 %vm527_vm0, %v526_v1  ;;  %v76_v6 = vld [vmem:[#allocation6 + $0x8] sm:$0xff]  ;;  %v74_v8 = vld [vmem:[#allocation3] sm:$0xff]  ;;  %v371_v18 = vld [vmem:[%s667_s4] ss:$0 sm:$0xff]  ;;  %vm251_vm4 = vcmask 261120   ;;  %s529_s4 = smov [#allocation9]  }
  0x3c   :  { %387 = vmatpush3.msk.msra.mxu1 %vm83_vm1, %v78_v3  ;;  %v410_v7 = vpack.c.bf16 %v76_v6, %v75_v5  ;;  %v240_v9 = vld [vmem:[%s668_s5] sm:$0xff]  ;;  %v241_v10 = vld [vmem:[%s668_s5 + $0x8] sm:$0xff]  ;;  %v242_v12 = vld [vmem:[%s668_s5 + $0x10] sm:$0xff]  ;;  %s356_s21 = sshll.u32 %s529_s4, 4  ;;  %s357_s21 = int_to_ptr.vmem [resolvable:$true] %s356_s21 }
  0x3d   :  { %389 = vmatmul.mubr.msk.f32.vlgmr.msra.gmra.mrb[0].mxu1 %vm79_vm2, %v77_v4  ;;  %409 = vmatprep.subr.bf16.mxu1 %v528_v2  ;;  %v413_v11 = vpack.c.bf16 %v241_v10, %v240_v9  ;;  %v243_v13 = vld [vmem:[%s668_s5 + $0x18] sm:$0xff]  ;;  %v372_v23 = vld [vmem:[%s669_s6] ss:$0 sm:$0xff]  ;;  %s493_s22 = scalar_lea.vmem %s357_s21, 128  ;;  %p498_p11 = scmp.lt.s32.totalorder %s357_s21, %s357_s21 }
  0x3e   :  { %395 = vmatprep.mubr.msk.f32.mxu1 %vm527_vm0, %v526_v1  ;;  %411 = vmatpush3.bf16.msra.mxu1 %v410_v7  ;;  %v416_v14 = vpack.c.bf16 %v243_v13, %v242_v12  ;;  %v374_v27 = vld [vmem:[%s670_s7] ss:$0 sm:$0xff]  ;;  %p494_p10 = scmp.ne.s32.totalorder %s357_s21, %s493_s22  ;;  %p499_p12 = scmp.lt.s32.totalorder %s493_s22, %s493_s22 }
  0x3f   :  { %414 = vmatpush3.bf16.msra.mxu0 %v413_v11 }
  0x40   :  { %415 = vmatprep.subr.bf16.mxu0 %v528_v2  ;;  %p500_p13 = por %p499_p12, %p498_p11 }
  0x41   :  { %396 = vmatmul.mubr.msk.f32.vlgmr.msra.gmra.mrb[2].mxu1 %vm157_vm3, %v74_v8 }
  0x42   :  { %p501_p0 = pnand %p500_p13, %p494_p10 }
  0x43   :  { %417 = vmatpush3.bf16.msra.mxu0 %v416_v14 }
 0x110   :  { %v153_v15 = vpop.f32.mrb[0].mxu1 }
 0x111   :  { %v390_v16 = vpop.f32.mrb[1].mxu1 }
 0x114   :  { %v227_v17 = vpop.f32.mrb[2].mxu1 }
 0x115   :  { %v228_v19 = vadd.f32 %v227_v17, %v153_v15  ;;  %v397_v20 = vpop.f32.mrb[3].mxu1 }
 0x117   :  { %v238_v21 = vadd.f32 %v371_v18, %v228_v19 }
 0x119   :  { %v239_v22 = vmax.f32 %v238_v21, 0.0 }
 0x11b   :  { %407 = vmatmul.mubr.msk.f32.vlgmr.msra.gmra.mrb[0].mxu0 %vm251_vm4, %v239_v22 }
 0x1ee   :  { %v321_v24 = vpop.f32.mrb[0].mxu0 }
 0x1ef   :  { %v322_v25 = vadd.f32 %v372_v23, %v321_v24  ;;  %v408_v26 = vpop.f32.mrb[1].mxu0 }
 0x1f1   :  { %v325_v28 = vmax.f32 %v322_v25, 0.0 }
 0x1f3   :  { %347 = vst.msk [vmem:[#allocation9] sm:$0xff] %vm251_vm4, %v325_v28  ;;  %v333_v29 = vmul.f32 %v374_v27, %v325_v28 }
 0x1f5   :  { %v334_v30 = vsel %vm251_vm4, %v333_v29, 0.0 }
 0x1f6   :  { %335 = vadd.xlane.f32.xlu0 %v334_v30 }
 0x1f7   :  { %504 = shalt.err (!%p501_p0)
}
 0x1f8   :  { %s505_s8 = scalar_lea.hbm %s673_s10, 128 }
 0x1f9   :  { %p506_p1 = scmp.ne.s32.totalorder %s673_s10, %s505_s8  ;;  %p509_p2 = scmp.lt.u32.totalorder %s505_s8, %s673_s10 }
 0x1fb   :  { %p511_p3 = pnand %p509_p2, %p506_p1 }
 0x1fd   :  { %514 = shalt.err (!%p511_p3)
}
 0x1fe   :  { %359 = dma.vmem_to_hbm [thread:$0]  %s357_s21, 128, %s673_s10, [#allocation5]   ;;  %v375_v31 = vld [vmem:[#allocation2] ss:$0 sm:$0xff]  ;;  %vm345_vm5 = vcmask 7168  }
 0x283   :  { %v336_v32 = vpop.xlane.xlu0 %335 }
 0x284   :  { %v344_v33 = vadd.f32 %v375_v31, %v336_v32 }
 0x286   :  { %346 = vst.msk [vmem:[%s672_s9] sm:$0xff] %vm345_vm5, %v344_v33 }
 0x287   :  { %519 = dma.done.wait [#allocation5], 128  }
 0x288   :  { %520 = vsyncadd [#allocation5], 4294967168 }
 0x289   :  { %365 = vsyncpa [#allocation4], 1 }
 0x28a   :  { %366 = vsyncpa [#allocation7], 1 }
 0x28b   :  { %367 = vsyncpa [#allocation5], 1 }

</bundles_post_ra>
